<compile_context>
chip_gen: v5e
topology: v5e:2x2
jax: 0.10.0
libtpu: 0.0.40
codegen_flags: <defaults>
</compile_context>

<pallas_src>
import math

import jax
import jax.numpy as jnp
from jax.experimental import pallas as pl
from jax.experimental.pallas import tpu as pltpu


_SQRT_2_OVER_PI = math.sqrt(2.0 / math.pi)


def _gelu_tanh(x):
    # tanh-approximate GELU in f32, matching F.gelu(..., approximate='tanh').
    return 0.5 * x * (1.0 + jnp.tanh(_SQRT_2_OVER_PI * (x + 0.044715 * x * x * x)))


def _round_up(v, m):
    return (v + m - 1) // m * m


def _cdiv(a, b):
    return -(-a // b)


def _vmem_capacity_bytes():
    # Generation-aware VMEM capacity; conservative 64 MiB (v7x) fallback.
    try:
        info = pltpu.get_tpu_info()
        cap = getattr(info, "vmem_capacity_bytes", None)
        if cap:
            return int(cap)
    except Exception:
        pass
    return 64 << 20


# ----------------------------- kernels -------------------------------------


def _mlp_kernel_single_f(x_ref, w1_ref, w2_ref, o_ref):
    # Single FFN tile: no accumulator scratch, write straight to o_ref.
    h = jnp.dot(x_ref[...], w1_ref[...], preferred_element_type=jnp.float32)
    g = _gelu_tanh(h)
    o_ref[...] = jnp.dot(g.astype(w2_ref.dtype), w2_ref[...],
                         preferred_element_type=jnp.float32).astype(o_ref.dtype)


def _mlp_kernel_multi_f(x_ref, w1_ref, w2_ref, o_ref, acc_ref):
    # x_ref : (tm, H)   w1_ref : (H, tf)   w2_ref : (tf, H)
    # o_ref : (tm, H)   acc_ref: (tm, H) f32, resident across the f axis.
    f = pl.program_id(2)

    @pl.when(f == 0)
    def _():
        acc_ref[...] = jnp.zeros_like(acc_ref)

    # First matmul contracts the full H, so GELU on this (tm, tf) slice of the
    # intermediate is exact; the second matmul is accumulated over F in f32.
    h = jnp.dot(x_ref[...], w1_ref[...], preferred_element_type=jnp.float32)
    g = _gelu_tanh(h)
    acc_ref[...] += jnp.dot(g.astype(w2_ref.dtype), w2_ref[...],
                            preferred_element_type=jnp.float32)

    @pl.when(f == pl.num_programs(2) - 1)
    def _():
        o_ref[...] = acc_ref[...].astype(o_ref.dtype)


# ----------------------------- wrapper --------------------------------------


def moe_mlp_forward(x, w1, w2, *, tm=None, tf=None,
                    compute_dtype=jnp.bfloat16, out_dtype=None,
                    vmem_capacity_bytes=None):
    """Expert MLP forward: bmm(gelu_tanh(bmm(x, w1)), w2).

    x : (E, T, H), w1 : (E, H, F), w2 : (E, F, H)  ->  (E, T, H)

    tm (token tile) is the primary tuning knob: weights are re-streamed from
    HBM once per t-tile, so larger tm == less weight HBM traffic.
    """
    E, T, H = x.shape
    assert w1.shape[0] == E and w1.shape[1] == H
    F = w1.shape[2]
    assert w2.shape == (E, F, H)
    out_dtype = x.dtype if out_dtype is None else out_dtype

    comp_isize = jnp.dtype(compute_dtype).itemsize
    out_isize = jnp.dtype(out_dtype).itemsize

    vmem_cap = vmem_capacity_bytes or _vmem_capacity_bytes()
    budget = int(0.8 * vmem_cap)

    # ---- tf: FFN tile (innermost reduction axis) ----
    if tf is None:
        if F <= 512:
            tf = F                      # single f step, no padding
        else:
            tf = 512
            # Shrink until double-buffered (w1 + w2) tiles use <= half budget.
            while tf > 128 and 4 * H * tf * comp_isize > budget // 2:
                tf //= 2
    tf = min(tf, F)
    assert tf == F or tf % 128 == 0, "tf must be a multiple of 128 or equal F"
    F_p = F if F % tf == 0 else _round_up(F, tf)
    n_f = F_p // tf
    multi_f = n_f > 1

    # ---- tm: token tile — as large as VMEM allows (weight reuse) ----
    tm_align = 16 if comp_isize <= 2 else 8
    if tm is None:
        w_bytes = 4 * H * tf * comp_isize                       # w1+w2, 2x buffered
        per_row = H * (2 * comp_isize + 2 * out_isize + (4 if multi_f else 0))
        tm_max = max((budget - w_bytes) // per_row, tm_align)
        tm = min(_round_up(T, tm_align), tm_max)
        if tm >= 128:
            tm = (tm // 128) * 128                              # MXU-friendly
        else:
            tm = max((tm // tm_align) * tm_align, tm_align)
    assert tm % 8 == 0, "tm must be a multiple of 8"
    n_t = _cdiv(T, tm)

    # v7x megacore: if E==1 collapses both parallel axes to one tile, split T
    # so both TensorCores get work (only worth it for large T / compute-bound).
    if E == 1 and n_t == 1 and T >= 256:
        tm = _round_up(_cdiv(T, 2), 128)
        n_t = _cdiv(T, tm)

    # ---- operands: cast only when needed, pad only F (and only if needed) ----
    xc = x if x.dtype == compute_dtype else x.astype(compute_dtype)
    w1c = w1 if w1.dtype == compute_dtype else w1.astype(compute_dtype)
    w2c = w2 if w2.dtype == compute_dtype else w2.astype(compute_dtype)
    if F_p != F:
        w1c = jnp.pad(w1c, ((0, 0), (0, 0), (0, F_p - F)))
        w2c = jnp.pad(w2c, ((0, 0), (0, F_p - F), (0, 0)))

    # ---- VMEM accounting (double-buffered blocks + f32 accumulator) ----
    footprint = (2 * tm * H * comp_isize            # x
                 + 4 * H * tf * comp_isize          # w1 + w2
                 + 2 * tm * H * out_isize           # out (at out_dtype!)
                 + (tm * H * 4 if multi_f else 0))  # f32 acc scratch
    vmem_limit = int(min(max(footprint + (4 << 20), 32 << 20),
                         int(0.9 * vmem_cap)))

    cost = pl.CostEstimate(
        flops=int(4 * E * T * H * F_p),                        # two matmuls
        transcendentals=int(E * T * F_p),                      # tanh in GELU
        bytes_accessed=int((xc.size + w1c.size + w2c.size) * comp_isize
                           + E * T * H * out_isize),
    )

    if multi_f:
        grid = (E, n_t, n_f)
        in_specs = [
            pl.BlockSpec((None, tm, H), lambda e, t, f: (e, t, 0)),   # x
            pl.BlockSpec((None, H, tf), lambda e, t, f: (e, 0, f)),   # w1
            pl.BlockSpec((None, tf, H), lambda e, t, f: (e, f, 0)),   # w2
        ]
        out_spec = pl.BlockSpec((None, tm, H), lambda e, t, f: (e, t, 0))
        scratch = [pltpu.VMEM((tm, H), jnp.float32)]
        kernel = _mlp_kernel_multi_f
        dims = ("parallel", "parallel", "arbitrary")
    else:
        grid = (E, n_t)
        in_specs = [
            pl.BlockSpec((None, tm, H), lambda e, t: (e, t, 0)),      # x
            pl.BlockSpec((None, H, tf), lambda e, t: (e, 0, 0)),      # w1
            pl.BlockSpec((None, tf, H), lambda e, t: (e, 0, 0)),      # w2
        ]
        out_spec = pl.BlockSpec((None, tm, H), lambda e, t: (e, t, 0))
        scratch = []
        kernel = _mlp_kernel_single_f
        dims = ("parallel", "parallel")

    return pl.pallas_call(
        kernel,
        out_shape=jax.ShapeDtypeStruct((E, T, H), out_dtype),
        grid_spec=pltpu.PrefetchScalarGridSpec(
            num_scalar_prefetch=0,
            grid=grid,
            in_specs=in_specs,
            out_specs=out_spec,
            scratch_shapes=scratch),
        compiler_params=pltpu.CompilerParams(
            dimension_semantics=dims,
            vmem_limit_bytes=vmem_limit),
        cost_estimate=cost,
    )(xc, w1c, w2c)


def reference_forward(x, w1, w2, compute_dtype=jnp.bfloat16, out_dtype=None):
    # Mirrors the kernel's numerics: bf16 operands, f32 accumulation, f32 GELU.
    out_dtype = x.dtype if out_dtype is None else out_dtype
    xc = x.astype(compute_dtype)
    w1c = w1.astype(compute_dtype)
    w2c = w2.astype(compute_dtype)
    h = jnp.einsum('eth,ehf->etf', xc, w1c, preferred_element_type=jnp.float32)
    g = _gelu_tanh(h).astype(compute_dtype)
    out = jnp.einsum('etf,efh->eth', g, w2c, preferred_element_type=jnp.float32)
    return out.astype(out_dtype)


if __name__ == "__main__":
    # Small, deterministic synthetic setup (experts_per_rank=2, hidden=32,
    # ffn_hidden=64, tokens_per_expert=16).  Weights stored in bf16 once
    # (the no-cast / no-pad fast path), as the review recommends.
    num_experts = 2
    tokens_per_expert = 16
    hidden_size = 32
    ffn_hidden_size = 64

    key = jax.random.PRNGKey(0)
    kx, k1, k2 = jax.random.split(key, 3)

    x = jax.random.normal(
        kx, (num_experts, tokens_per_expert, hidden_size),
        dtype=jnp.float32).astype(jnp.bfloat16)
    # w1 stored as (E, hidden, ffn) — i.e. the transposed copy done in __init__.
    w1 = (0.2 * jax.random.normal(
        k1, (num_experts, hidden_size, ffn_hidden_size),
        dtype=jnp.float32)).astype(jnp.bfloat16)
    w2 = (0.2 * jax.random.normal(
        k2, (num_experts, ffn_hidden_size, hidden_size),
        dtype=jnp.float32)).astype(jnp.bfloat16)

    out = jax.block_until_ready(moe_mlp_forward(x, w1, w2))
    ref = reference_forward(x, w1, w2)

    assert out.shape == (num_experts, tokens_per_expert, hidden_size)
    assert out.dtype == x.dtype
    assert jnp.allclose(out.astype(jnp.float32), ref.astype(jnp.float32),
                        atol=2e-2, rtol=2e-2), "mismatch vs reference"

    print("KERNEL_OK")
</pallas_src>

<mosaic_0001>
module attributes {stable_mosaic.version = 11 : i64} {
  func.func @_mlp_kernel_single_f(%arg0: i32, %arg1: i32, %arg2: memref<1x16x32xbf16, #tpu.memory_space<vmem>>, %arg3: memref<1x32x64xbf16, #tpu.memory_space<vmem>>, %arg4: memref<1x64x32xbf16, #tpu.memory_space<vmem>>, %arg5: memref<1x16x32xbf16, #tpu.memory_space<vmem>>) attributes {dimension_semantics = [#tpu.dimension_semantics<parallel>, #tpu.dimension_semantics<parallel>], iteration_bounds = array<i64: 2, 1>, scalar_prefetch = 0 : i64, scratch_operands = 0 : i64, tpu.core_type = #tpu.core_type<tc>, window_params = [{transform_indices = @transform_0, window_bounds = array<i64: 1, 16, 32>}, {transform_indices = @transform_1, window_bounds = array<i64: 1, 32, 64>}, {transform_indices = @transform_2, window_bounds = array<i64: 1, 64, 32>}, {transform_indices = @transform_3, window_bounds = array<i64: 1, 16, 32>}]} {
    %c0 = arith.constant 0 : index
    %c0_0 = arith.constant 0 : index
    %c0_1 = arith.constant 0 : index
    %0 = vector.load %arg2[%c0, %c0_0, %c0_1] : memref<1x16x32xbf16, #tpu.memory_space<vmem>>, vector<1x16x32xbf16>
    %1 = vector.shape_cast %0 : vector<1x16x32xbf16> to vector<16x32xbf16>
    %c0_2 = arith.constant 0 : index
    %c0_3 = arith.constant 0 : index
    %c0_4 = arith.constant 0 : index
    %2 = vector.load %arg3[%c0_2, %c0_3, %c0_4] : memref<1x32x64xbf16, #tpu.memory_space<vmem>>, vector<1x32x64xbf16>
    %3 = vector.shape_cast %2 : vector<1x32x64xbf16> to vector<32x64xbf16>
    %cst = arith.constant dense<0.000000e+00> : vector<16x64xf32>
    %4 = tpu.matmul %1, %3, %cst {dimension_numbers = #tpu.dot_dimension_numbers<[1], [0], [0], [1], [0, 0, 1, 1], [], []>} : vector<16x32xbf16>, vector<32x64xbf16>, vector<16x64xf32> -> vector<16x64xf32>
    %cst_5 = arith.constant 5.000000e-01 : f32
    %5 = vector.broadcast %cst_5 : f32 to vector<16x64xf32>
    %6 = arith.mulf %5, %4 : vector<16x64xf32>
    %cst_6 = arith.constant 4.471500e-02 : f32
    %7 = vector.broadcast %cst_6 : f32 to vector<16x64xf32>
    %8 = arith.mulf %7, %4 : vector<16x64xf32>
    %9 = arith.mulf %8, %4 : vector<16x64xf32>
    %10 = arith.mulf %9, %4 : vector<16x64xf32>
    %11 = arith.addf %4, %10 : vector<16x64xf32>
    %cst_7 = arith.constant 0.797884583 : f32
    %12 = vector.broadcast %cst_7 : f32 to vector<16x64xf32>
    %13 = arith.mulf %12, %11 : vector<16x64xf32>
    %14 = math.tanh %13 : vector<16x64xf32>
    %cst_8 = arith.constant 1.000000e+00 : f32
    %15 = vector.broadcast %cst_8 : f32 to vector<16x64xf32>
    %16 = arith.addf %15, %14 : vector<16x64xf32>
    %17 = arith.mulf %6, %16 : vector<16x64xf32>
    %18 = arith.truncf %17 : vector<16x64xf32> to vector<16x64xbf16>
    %c0_9 = arith.constant 0 : index
    %c0_10 = arith.constant 0 : index
    %c0_11 = arith.constant 0 : index
    %19 = vector.load %arg4[%c0_9, %c0_10, %c0_11] : memref<1x64x32xbf16, #tpu.memory_space<vmem>>, vector<1x64x32xbf16>
    %20 = vector.shape_cast %19 : vector<1x64x32xbf16> to vector<64x32xbf16>
    %cst_12 = arith.constant dense<0.000000e+00> : vector<16x32xf32>
    %21 = tpu.matmul %18, %20, %cst_12 {dimension_numbers = #tpu.dot_dimension_numbers<[1], [0], [0], [1], [0, 0, 1, 1], [], []>} : vector<16x64xbf16>, vector<64x32xbf16>, vector<16x32xf32> -> vector<16x32xf32>
    %22 = arith.truncf %21 : vector<16x32xf32> to vector<16x32xbf16>
    %c0_13 = arith.constant 0 : index
    %c0_14 = arith.constant 0 : index
    %c0_15 = arith.constant 0 : index
    %23 = vector.load %arg5[%c0_13, %c0_14, %c0_15] : memref<1x16x32xbf16, #tpu.memory_space<vmem>>, vector<1x16x32xbf16>
    %24 = vector.shape_cast %23 : vector<1x16x32xbf16> to vector<16x32xbf16>
    %25 = vector.shape_cast %22 : vector<16x32xbf16> to vector<1x16x32xbf16>
    tpu.vector_store %arg5[%c0_13, %c0_14, %c0_15], %25 {strides = array<i32>} : memref<1x16x32xbf16, #tpu.memory_space<vmem>>, vector<1x16x32xbf16>,
    return
  }
  func.func @transform_0(%arg0: i32, %arg1: i32) -> (i32, i32, i32) {
    %c0_i32 = arith.constant 0 : i32
    %c0_i32_0 = arith.constant 0 : i32
    return %arg0, %arg1, %c0_i32 : i32, i32, i32
  }
  func.func @transform_1(%arg0: i32, %arg1: i32) -> (i32, i32, i32) {
    %c0_i32 = arith.constant 0 : i32
    %c0_i32_0 = arith.constant 0 : i32
    %c0_i32_1 = arith.constant 0 : i32
    return %arg0, %c0_i32, %c0_i32_0 : i32, i32, i32
  }
  func.func @transform_2(%arg0: i32, %arg1: i32) -> (i32, i32, i32) {
    %c0_i32 = arith.constant 0 : i32
    %c0_i32_0 = arith.constant 0 : i32
    %c0_i32_1 = arith.constant 0 : i32
    return %arg0, %c0_i32, %c0_i32_0 : i32, i32, i32
  }
  func.func @transform_3(%arg0: i32, %arg1: i32) -> (i32, i32, i32) {
    %c0_i32 = arith.constant 0 : i32
    %c0_i32_0 = arith.constant 0 : i32
    return %arg0, %arg1, %c0_i32 : i32, i32, i32
  }
}

</mosaic_0001>

<bundles_post_ra>
// kernel: tpu_custom_call.1
= control target key start
LH: loop header
LB: loop body
LE: loop exit
PB: predicated region body
PF: predicated region fallthrough
CT: control target
= control target key end

     0   :  { %8 = vsyncpa [#allocation3], 0  ;;  %s801_s0 = inlined_call_operand.vmem [shape: bf16[2,16,32], index: 0, kind: input, shape index: {}]   ;;  %s802_s1 = inlined_call_operand.vmem [shape: bf16[2,32,64], index: 1, kind: input, shape index: {}]   ;;  %s803_s2 = inlined_call_operand.vmem [shape: bf16[2,64,32], index: 2, kind: input, shape index: {}]   ;;  %s804_s3 = inlined_call_operand.hbm [shape: bf16[2,16,32], index: 3, kind: output, shape index: {}]  }
   0x1   :  { %10 = vsyncpa [#allocation3 + $0x1], 0  ;;  %s698_s12 = smov 0   ;;  %s700_s13 = smov 0  }
   0x2   :  { %s702_s14 = smov 0   ;;  %s704_s15 = smov 0  }
   0x3   :  { %s706_s16 = smov 0   ;;  %s708_s17 = smov 0  }
   0x4 LB: > { %s477_s18 = sadd.s32 4294967295, %s674_s17   ;;  %s478_s19 = sadd.s32 4294967294, %s674_s17   ;;  %s674_s17 = sphi %s708_s17, %s16_s17   ;;  %s670_s16 = sphi %s706_s16, %s811_s16   ;;  %s666_s15 = sphi %s704_s15, %s810_s15   ;;  %s662_s14 = sphi %s702_s14, %s809_s14   ;;  %s658_s13 = sphi %s700_s13, %s808_s13   ;;  %s654_s12 = sphi %s698_s12, %s807_s12  }
   0x5   : > { %s28_s20 = sadd.s32 1, %s670_s16  ;;  %s117_s21 = sadd.s32 1, %s662_s14 }
   0x6   : > { %p30_p0 = scmp.ge.s32.totalorder %s28_s20, 2  ;;  %p127_p1 = scmp.ne.s32.totalorder %s662_s14, %s658_s13 }
   0x7   : > { %p128_p2 = scmp.eq.s32.totalorder %s477_s18, 1  ;;  %p133_p3 = scmp.ne.s32.totalorder %s658_s13, %s654_s12 }
   0x8   : > { %s813_s20 = smov (%p30_p0, %s28_s20), 0  ;;  %p134_p5 = scmp.eq.s32.totalorder %s478_s19, 1 }
   0x9   : > { %p738_p4 = por %p128_p2, %p127_p1  ;;  %s112_s23 = ssub.s32 %s670_s16, %s813_s20 }
   0xa   : > { %p481_p6 = scmp.ge.s32.totalorder %s674_s17, 1  ;;  %p115_p7 = scmp.eq.s32.totalorder %s112_s23, 0 }
   0xb   : > { %p745_p8 = por %p134_p5, %p133_p3  ;;  %p181_p9 = scmp.lt.s32.totalorder %s674_s17, 3 }
   0xc   : > { %s751_s25 = scalar_select %p115_p7, %s662_s14, %s117_s21  }
   0xd   : > { %p182_p10 = pnand %p481_p6, %p181_p9 }
   0xe   : > { %p220_p11 = scmp.lt.s32.totalorder (!%p182_p10), %s666_s15, 1  ;;  %s216_s18 = sand.u32 (!%p182_p10), 1, %s658_s13  }
   0xf   : > { %185 = sbr.rel (%p182_p10) target bundleno = 329 (0x149), region = 32  ;;  %s482_s19 = sshll.u32 (!%p182_p10), %s216_s18, 3 }
  0x10   : > { %s534_s21 = sshll.u32 (!%p182_p10), %s666_s15, 3  ;;  %s218_s28 = scalar_lea.vmem (!%p182_p10), [#allocation2], %s482_s19 }
  0x11   : > { %s371_s29 = sshll.u32 (!%p182_p10), %s218_s28, 4  ;;  %s372_s29 = int_to_ptr.vmem [resolvable:$true] %s371_s29 }
  0x14   : > { %s221_s26 = scalar_select %p220_p11, %s666_s15, 1  ;;  %vm264_vm0 = vcmask 261120   ;;  %vm333_vm1 = vcmask 523264   ;;  %vm353_vm2 = vcmask 257024  }
  0x16   : > { %s525_s27 = sshll.u32 %s221_s26, 4  ;;  %s524_s4 = sshll.u32 %s221_s26, 3 }
  0x17   : > { %s233_s30 = scalar_lea.vmem %s802_s1, %s525_s27  ;;  %s227_s7 = scalar_lea.vmem %s801_s0, %s524_s4 }
  0x18   : > { %v529_v0 = vld [vmem:[%s233_s30 + $0x8] sm:$0xff]  ;;  %v528_v1 = vld [vmem:[%s233_s30] sm:$0xff]  ;;  %s526_s8 = sshll.u32 %s221_s26, 5  ;;  %s370_s27 = scalar_lea.hbm %s804_s3, %s534_s21 }
  0x19   : > { %274 = vmatpush.bf16.msra.mxu0 %v529_v0  ;;  %v527_v2 = vld [vmem:[%s227_s7] sm:$0xff]  ;;  %s238_s11 = scalar_lea.vmem %s803_s2, %s526_s8  ;;  %s373_s30 = sshll.u32 %s370_s27, 4  ;;  %s374_s30 = int_to_ptr.hbm [resolvable:$true] %s373_s30 }
  0x1a   : > { %v533_v3 = vld [vmem:[%s238_s11 + $0x18] sm:$0xff]  ;;  %v532_v4 = vld [vmem:[%s238_s11 + $0x10] sm:$0xff]  ;;  %v531_v5 = vld [vmem:[%s238_s11 + $0x8] sm:$0xff]  ;;  %s357_s4 = scalar_lea.sflag [#allocation3], %s216_s18  ;;  %s610_s5 = sshra.s32 %s374_s30, 4  ;;  %s611_s5 = int_to_ptr.hbm [resolvable:$true] %s610_s5 }
  0x1b   : > { %341 = vmatpush.bf16.msra.mxu1 %v533_v3  ;;  %v530_v6 = vld [vmem:[%s238_s11] sm:$0xff]  ;;  %s612_s15 = scalar_lea.hbm %s611_s5, 8  ;;  %s616_s8 = scalar_lea.hbm %s804_s3, 16 }
  0x1c   : > { %p613_p12 = scmp.ne.s32.totalorder %s611_s5, %s612_s15  ;;  %p617_p1 = scmp.lt.s32.totalorder %s611_s5, %s804_s3 }
  0x1d   : > { %275 = vmatpush.bf16.msra.mxu0 %v528_v1  ;;  %p618_p2 = scmp.lt.s32.totalorder %s616_s8, %s612_s15 }
  0x1e   : > { %p614_p13 = pnand %p613_p12, %p738_p4 }
  0x1f   : > { %342 = vmatpush.bf16.msra.mxu1 %v532_v4  ;;  %p619_p3 = por %p618_p2, %p617_p1 }
  0x20   : > { %501 = vmatmul.msk.bf16.vlgmr.msra.gmra.mxu0 %vm264_vm0, %v527_v2  ;;  %p615_p0 = pneg %p614_p13 }
  0x22   : > { %p620_p5 = pnand %p619_p3, %p615_p0 }
  0x23   : > { %343 = vmatpush.bf16.msra.mxu1 %v531_v5 }
  0x27   : > { %344 = vmatpush.bf16.msra.mxu1 %v530_v6 }
  0x9d   : > { %v277_v7 = vpop.f32.mrf.mxu0 }
  0x9e   : > { %v284_v8 = vmul.f32 0.044715, %v277_v7  ;;  %v282_v23 = vmul.f32 0.5, %v277_v7 }
  0xa0   : > { %v286_v9 = vmul.f32 %v284_v8, %v277_v7 }
  0xa2   : > { %v288_v10 = vmul.f32 %v286_v9, %v277_v7 }
  0xa4   : > { %v290_v11 = vadd.f32 %v288_v10, %v277_v7 }
  0xa5   : > { %v279_v12 = vpop.f32.mrf.mxu0 }
  0xa6   : > { %v285_v13 = vmul.f32 0.044715, %v279_v12  ;;  %v292_v14 = vmul.f32 0.7978846, %v290_v11  ;;  %v283_v22 = vmul.f32 0.5, %v279_v12 }
  0xa8   : > { %v287_v15 = vmul.f32 %v285_v13, %v279_v12  ;;  %592 = vtanh.f32 %v292_v14 }
  0xaa   : > { %v289_v16 = vmul.f32 %v287_v15, %v279_v12 }
  0xac   : > { %v291_v17 = vadd.f32 %v289_v16, %v279_v12 }
  0xae   : > { %v293_v18 = vmul.f32 0.7978846, %v291_v17  ;;  %v593_v19 = vpop.eup %592 }
  0xaf   : > { %v296_v20 = vadd.f32 1.0, %v593_v19 }
  0xb0   : > { %594 = vtanh.f32 %v293_v18 }
  0xb1   : > { %v298_v25 = vmul.f32 %v296_v20, %v282_v23 }
  0xb6   : > { %v595_v21 = vpop.eup %594 }
  0xb7   : > { %v297_v24 = vadd.f32 1.0, %v595_v21 }
  0xb9   : > { %v299_v26 = vmul.f32 %v297_v24, %v283_v22 }
  0xbb   : > { %v300_v27 = vpack.c.bf16 %v299_v26, %v298_v25 }
  0xbd   : > { %518 = vmatmul.msk.bf16.vlgmr.msra.gmra.mxu1 %vm333_vm1, %v300_v27 }
 0x13a   : > { %v346_v28 = vpop.f32.mrf.mxu1 }
 0x13b   : > { %v351_v29 = vpack.c.bf16 %v346_v28, %v346_v28 }
 0x13d   : > { %354 = vst.msk [vmem:[%s218_s28] sm:$0xf] %vm353_vm2, %v351_v29 }
 0x142   : > { %v348_v30 = vpop.f32.mrf.mxu1 }
 0x143   : > { %v352_v31 = vpack.c.bf16 %v348_v30, %v348_v30 }
 0x145   : > { %355 = vst.msk [vmem:[%s218_s28 + $0x4] sm:$0xf] %vm353_vm2, %v352_v31 }
 0x146   : > { %623 = shalt.err (!%p620_p5)
}
 0x147   : > { %s676_s11 = smov 64   ;;  %s677_s18 = smov 4  }
 0x148   : > { %535 = dma.vmem_to_hbm [thread:$0]  (%p738_p4), %s372_s29, 128, %s374_s30, %s357_s4, %s676_s11, %s676_s11, %s677_s18  }
 0x149 PF: > { %p541_p6 = scmp.ge.s32.totalorder %s674_s17, 2  ;;  %s388_s19 = sand.u32 1, %s654_s12  }
 0x14a   : > { %s389_s21 = scalar_lea.sflag [#allocation3], %s388_s19 }
 0x14b   : > { %p538_p7 = pnand %p541_p6, %p745_p8 }
 0x14d   : > { %p539_p9 = pneg %p538_p7 }
 0x14f   : > { %649 = dma.done.wait (%p539_p9), %s389_s21, 128  }
 0x150   : > { %651 = vsyncadd (%p539_p9), %s389_s21, 4294967168  ;;  %s16_s17 = sadd.s32 1, %s674_s17   ;;  %s807_s12 = smov %s658_s13 }
 0x151   : > { %p13_p10 = scmp.ge.s32.totalorder %s16_s17, 4   ;;  %s808_s13 = smov %s662_s14 }
 0x152   : > { %s809_s14 = smov %s751_s25  ;;  %s810_s15 = smov %s670_s16 }
 0x153   : > { %s811_s16 = smov %s813_s20  ;;  %15 = sbr.rel (!%p13_p10) target bundleno = 4 (0x4), region = 73 }
 0x158   :  { %395 = vsyncpa [#allocation3], 1 }
 0x159   :  { %397 = vsyncpa [#allocation3 + $0x1], 1 }

</bundles_post_ra>
